<compile_context>
chip_gen: v6e
topology: v6e:2x2x1
jax: 0.10.0
libtpu: 0.0.40
codegen_flags: <defaults>
</compile_context>

<pallas_src>
import jax
import jax.numpy as jnp
from jax.experimental import pallas as pl
from jax.experimental.pallas import tpu as pltpu


def _vmem_capacity_bytes():
    """Physical VMEM per TensorCore; conservative (v7x) default if query fails."""
    try:
        info = pltpu.get_tpu_info()
        cap = getattr(info, "vmem_capacity_bytes", None)
        if cap:
            return int(cap)
    except Exception:
        pass
    return 64 << 20


def _round_down(x, m):
    return (x // m) * m


def baseline_forward(x_nchw, params, *, input_cast_dtype=None,
                     block_budget_bytes=None, bt=None, s_chunk=None,
                     sub_lanes=None):
    """x_nchw: (B, C, H, W), f32 or bf16. Returns dict of f32 outputs."""
    B, C, Hs, Ws = x_nchw.shape
    S = Hs * Ws

    wft = params["w_feat_t"]   # (hidden, C)  1x1-conv weight (out_ch, in_ch)
    bf = params["b_feat"]      # (hidden, 1)
    wc = params["w_cla"]       # (hidden, NC)
    bc = params["b_cla"]       # (1, NC)
    wr = params["w_rep"]       # (NC, RD)
    br = params["b_rep"]       # (1, RD)
    hidden = wft.shape[0]
    num_classes = wc.shape[1]
    represent_dim = wr.shape[1]
    assert wft.shape[1] == C

    # Optional wrapper-side cast (e.g. bf16) to halve HBM read bytes.
    if input_cast_dtype is not None and x_nchw.dtype != jnp.dtype(input_cast_dtype):
        x_nchw = x_nchw.astype(input_cast_dtype)

    # NCHW -> (B, C, S): pure reshape (no transpose, no extra HBM traffic).
    x3d = x_nchw.reshape(B, C, S)
    x_dtype = x3d.dtype
    itemsize = jnp.dtype(x_dtype).itemsize

    # --- generation-aware VMEM / DMA-block sizing -------------------------
    vmem_cap = _vmem_capacity_bytes()
    if vmem_cap >= (100 << 20):        # v5e / v6e: 128 MiB physical VMEM
        vmem_limit = 96 << 20
        default_budget = 16 << 20
    else:                              # v7x: 64 MiB physical VMEM
        vmem_limit = 48 << 20
        default_budget = 8 << 20
    budget = int(block_budget_bytes) if block_budget_bytes else default_budget

    per_image_bytes = C * S * itemsize

    # --- choose (bt, s_chunk): pack whole images, or chunk the spatial axis --
    if s_chunk is not None:
        s_chunk_sel = int(s_chunk)
        assert s_chunk_sel == S or s_chunk_sel % 128 == 0, \
            "s_chunk must be a multiple of 128 or equal to S"
        bt_sel = int(bt) if bt else 1
    elif per_image_bytes <= budget:
        # Whole image(s) per step: one big contiguous DMA of bt*C*S elements.
        max_bt = max(1, min(B, 16, budget // max(per_image_bytes, 1)))
        bt_sel = int(bt) if bt else max(d for d in range(1, max_bt + 1) if B % d == 0)
        s_chunk_sel = S
    else:
        # A single image exceeds the budget: chunk the spatial axis.
        bt_sel = int(bt) if bt else 1
        lanes = budget // max(C * itemsize, 1)
        s_chunk_sel = max(128, _round_down(lanes, 128))
    assert B % bt_sel == 0, "bt must divide the batch size"
    n_b = B // bt_sel
    n_s = pl.cdiv(S, s_chunk_sel)
    needs_mask = (n_s * s_chunk_sel != S)   # masked remainder chunk

    # --- inner compute tile: bounds the (hidden, sub) f32 temp to ~32 vregs --
    if sub_lanes is not None:
        sub = int(sub_lanes)
    else:
        sub = min(s_chunk_sel, 512)
        cap = max(128, _round_down((32 * 1024) // max(hidden, 1), 128))
        if sub > cap:
            sub = cap
    sub = max(1, min(sub, s_chunk_sel))
    n_full = s_chunk_sel // sub
    rem_sub = s_chunk_sel % sub

    inv_s = 1.0 / float(S)   # kept for exact mean-pool parity (negligible cost)

    def kernel(x_ref, wft_ref, bf_ref, wc_ref, bc_ref, wr_ref, br_ref,
               cla_ref, f_ref, ct_ref, acc_ref):
        s_idx = pl.program_id(1)

        @pl.when(s_idx == 0)
        def _init():
            acc_ref[...] = jnp.zeros_like(acc_ref)

        w_conv = wft_ref[...].astype(x_dtype)   # (hidden, C)
        bias = bf_ref[...]                      # (hidden, 1) f32
        chunk_base = s_idx * s_chunk_sel        # dynamic scalar

        # Hoisted constants (JAX does not CSE broadcast_in_dim inside loops).
        ones_sub = jnp.ones((1, sub), jnp.float32)
        iota_sub = jax.lax.broadcasted_iota(jnp.int32, (hidden, sub), 1)
        if rem_sub > 0:
            ones_rem = jnp.ones((1, rem_sub), jnp.float32)
            iota_rem = jax.lax.broadcasted_iota(jnp.int32, (hidden, rem_sub), 1)

        def gap_partial(b, off, width, ones_row, lane_iota):
            """1x1 conv + ReLU + lane-sum over lanes [off, off+width) of image b."""
            xs = x_ref[b, :, pl.ds(off, width)]                     # (C, width)
            h = jnp.dot(w_conv, xs, preferred_element_type=jnp.float32)
            h = jnp.maximum(h + bias, 0.0)                          # (hidden, width)
            if needs_mask:
                h = jnp.where(lane_iota + (chunk_base + off) < S, h, 0.0)
            # MXU ones-row contraction over the lane axis -> (1, hidden).
            return jax.lax.dot_general(
                ones_row, h, (((1,), (1,)), ((), ())),
                preferred_element_type=jnp.float32)

        for b in range(bt_sel):                 # static unroll; bt is small
            row = jnp.zeros((1, hidden), jnp.float32)
            if n_full > 0:
                if n_full <= 8:
                    for ss in range(n_full):    # short static inner loop
                        row = row + gap_partial(b, ss * sub, sub,
                                                ones_sub, iota_sub)
                else:
                    def body(ss, r, _b=b):
                        off = ss * sub
                        if sub % 128 == 0:
                            off = pl.multiple_of(off, 128)
                        return r + gap_partial(_b, off, sub, ones_sub, iota_sub)
                    row = jax.lax.fori_loop(0, n_full, body, row, unroll=2)
            if rem_sub > 0:
                row = row + gap_partial(b, n_full * sub, rem_sub,
                                        ones_rem, iota_rem)
            acc_ref[b:b + 1, :] = acc_ref[b:b + 1, :] + row

        # --- final step: metric (L2 norm) + cla_head + represent, batched ---
        @pl.when(s_idx == pl.num_programs(1) - 1)
        def _finish():
            feat = acc_ref[...] * inv_s                              # (bt, hidden)
            inv_norm = jax.lax.rsqrt(
                jnp.sum(feat * feat, axis=-1, keepdims=True) + 1e-12)
            f_mat = feat * inv_norm
            f_ref[:, 0, :] = f_mat
            cla = jnp.dot(f_mat, wc_ref[...],
                          preferred_element_type=jnp.float32) + bc_ref[...]
            cla_ref[:, 0, :] = cla
            ct_ref[:, 0, :] = jnp.dot(cla, wr_ref[...],
                                      preferred_element_type=jnp.float32) + br_ref[...]

    def full(arr):
        nd = arr.ndim
        return pl.BlockSpec(arr.shape, lambda b, s, _nd=nd: (0,) * _nd)

    grid_spec = pltpu.PrefetchScalarGridSpec(
        num_scalar_prefetch=0,
        grid=(n_b, n_s),
        in_specs=[
            pl.BlockSpec((bt_sel, C, s_chunk_sel), lambda b, s: (b, 0, s)),
            full(wft), full(bf), full(wc), full(bc), full(wr), full(br),
        ],
        out_specs=(
            pl.BlockSpec((bt_sel, 1, num_classes), lambda b, s: (b, 0, 0)),
            pl.BlockSpec((bt_sel, 1, hidden), lambda b, s: (b, 0, 0)),
            pl.BlockSpec((bt_sel, 1, represent_dim), lambda b, s: (b, 0, 0)),
        ),
        scratch_shapes=[pltpu.VMEM((bt_sel, hidden), jnp.float32)],
    )

    cla3, f3, ct3 = pl.pallas_call(
        kernel,
        grid_spec=grid_spec,
        out_shape=(
            jax.ShapeDtypeStruct((B, 1, num_classes), jnp.float32),
            jax.ShapeDtypeStruct((B, 1, hidden), jnp.float32),
            jax.ShapeDtypeStruct((B, 1, represent_dim), jnp.float32),
        ),
        compiler_params=pltpu.CompilerParams(
            # TODO(synk): for B == 1 on v7x the batch axis cannot feed both
            # TensorCores; a split-spatial two-accumulator variant would help.
            dimension_semantics=("parallel", "arbitrary"),
            vmem_limit_bytes=vmem_limit),
    )(x3d, wft, bf, wc, bc, wr, br)

    return {
        "cla_vector": cla3.reshape(B, num_classes),
        "f_vector": f3.reshape(B, hidden),
        "ct_vector": ct3.reshape(B, represent_dim),
    }


def init_params(key, in_channels, hidden_dim, num_classes, represent_dim):
    kw1, kb1, kw2, kb2, kw3, kb3 = jax.random.split(key, 6)
    scale = lambda fan_in: 1.0 / jnp.sqrt(jnp.float32(fan_in))
    return {
        "w_feat_t": jax.random.normal(kw1, (hidden_dim, in_channels), jnp.float32) * scale(in_channels),
        "b_feat":   0.5 * jax.random.normal(kb1, (hidden_dim, 1), jnp.float32),
        "w_cla":    jax.random.normal(kw2, (hidden_dim, num_classes), jnp.float32) * scale(hidden_dim),
        "b_cla":    0.5 * jax.random.normal(kb2, (1, num_classes), jnp.float32),
        "w_rep":    jax.random.normal(kw3, (num_classes, represent_dim), jnp.float32) * scale(num_classes),
        "b_rep":    0.5 * jax.random.normal(kb3, (1, represent_dim), jnp.float32),
    }


def reference_forward(x_nchw, params, extractor_dtype=jnp.float32):
    """Pure-JAX reference (full precision)."""
    B, C, Hs, Ws = x_nchw.shape
    hi = jax.lax.Precision.HIGHEST
    x = x_nchw.astype(jnp.float32).reshape(B, C, Hs * Ws)
    wft = params["w_feat_t"].astype(extractor_dtype).astype(jnp.float32)
    h = jnp.einsum("hc,bcs->bhs", wft, x, precision=hi) + params["b_feat"]
    h = jnp.maximum(h, 0.0)
    feat = jnp.mean(h, axis=-1)                                      # (B, H)
    f = feat * jax.lax.rsqrt(jnp.sum(feat * feat, axis=-1, keepdims=True) + 1e-12)
    cla = jnp.dot(f, params["w_cla"], precision=hi) + params["b_cla"]
    ct = jnp.dot(cla, params["w_rep"], precision=hi) + params["b_rep"]
    return {"cla_vector": cla, "f_vector": f, "ct_vector": ct}


def _check(out, ref, tag):
    for name in ("cla_vector", "f_vector", "ct_vector"):
        assert out[name].shape == ref[name].shape, (tag, name)
        assert jnp.allclose(out[name], ref[name], atol=1e-2, rtol=1e-2), (tag, name)


if __name__ == "__main__":
    key = jax.random.PRNGKey(0)
    kx, kp, kx2, kp2, kx3, kp3 = jax.random.split(key, 6)

    hidden_dim, num_classes, represent_dim = 32, 16, 8

    # Case A: spec-sized shapes (f32, tiny C) -> whole-image batch packing (bt=2),
    # MXU conv path, single grid step.
    B, C, Hs, Ws = 2, 4, 16, 16
    params = init_params(kp, C, hidden_dim, num_classes, represent_dim)
    x = jax.random.normal(kx, (B, C, Hs, Ws), jnp.float32)
    out = baseline_forward(x, params)
    jax.block_until_ready(out)
    _check(out, reference_forward(x, params), "A")

    # Case B: bf16 input (halved HBM/DMA bytes), larger C -> bf16 MXU conv path.
    C2, Hs2, Ws2 = 32, 8, 8
    params2 = init_params(kp2, C2, hidden_dim, num_classes, represent_dim)
    x2 = jax.random.normal(kx2, (B, C2, Hs2, Ws2), jnp.float32).astype(jnp.bfloat16)
    out2 = baseline_forward(x2, params2)
    jax.block_until_ready(out2)
    _check(out2, reference_forward(x2, params2, extractor_dtype=jnp.bfloat16), "B")

    # Case C: B=1, S=80*80=6400 -> whole-image block, inner fori_loop over
    # 512-lane sub-slices + static remainder tail (vreg-pressure bounding).
    C3, Hs3, Ws3 = 4, 80, 80
    params3 = init_params(kp3, C3, hidden_dim, num_classes, represent_dim)
    x3 = jax.random.normal(kx3, (1, C3, Hs3, Ws3), jnp.float32)
    out3 = baseline_forward(x3, params3)
    jax.block_until_ready(out3)
    ref3 = reference_forward(x3, params3)
    _check(out3, ref3, "C")

    # Case D: same data, tiny forced block budget -> spatial chunking with a
    # lane-masked remainder chunk (exercises the grid-reduction + mask path).
    out4 = baseline_forward(x3, params3, block_budget_bytes=32 << 10)
    jax.block_until_ready(out4)
    _check(out4, ref3, "D")

    print("KERNEL_OK")
</pallas_src>

<mosaic_0001>
module attributes {stable_mosaic.version = 11 : i64} {
  func.func @kernel(%arg0: i32, %arg1: i32, %arg2: memref<2x4x256xf32, #tpu.memory_space<vmem>>, %arg3: memref<32x4xf32, #tpu.memory_space<vmem>>, %arg4: memref<32x1xf32, #tpu.memory_space<vmem>>, %arg5: memref<32x16xf32, #tpu.memory_space<vmem>>, %arg6: memref<1x16xf32, #tpu.memory_space<vmem>>, %arg7: memref<16x8xf32, #tpu.memory_space<vmem>>, %arg8: memref<1x8xf32, #tpu.memory_space<vmem>>, %arg9: memref<2x1x16xf32, #tpu.memory_space<vmem>>, %arg10: memref<2x1x32xf32, #tpu.memory_space<vmem>>, %arg11: memref<2x1x8xf32, #tpu.memory_space<vmem>>, %arg12: memref<2x32xf32, #tpu.memory_space<vmem>>) attributes {dimension_semantics = [#tpu.dimension_semantics<parallel>, #tpu.dimension_semantics<arbitrary>], iteration_bounds = array<i64: 1, 1>, scalar_prefetch = 0 : i64, scratch_operands = 1 : i64, tpu.core_type = #tpu.core_type<tc>, window_params = [{transform_indices = @transform_0, window_bounds = array<i64: 2, 4, 256>}, {pipeline_mode = #tpu.pipeline_mode<synchronous>, transform_indices = @transform_1, window_bounds = array<i64: 32, 4>}, {pipeline_mode = #tpu.pipeline_mode<synchronous>, transform_indices = @transform_2, window_bounds = array<i64: 32, 1>}, {pipeline_mode = #tpu.pipeline_mode<synchronous>, transform_indices = @transform_3, window_bounds = array<i64: 32, 16>}, {pipeline_mode = #tpu.pipeline_mode<synchronous>, transform_indices = @transform_4, window_bounds = array<i64: 1, 16>}, {pipeline_mode = #tpu.pipeline_mode<synchronous>, transform_indices = @transform_5, window_bounds = array<i64: 16, 8>}, {pipeline_mode = #tpu.pipeline_mode<synchronous>, transform_indices = @transform_6, window_bounds = array<i64: 1, 8>}, {transform_indices = @transform_7, window_bounds = array<i64: 2, 1, 16>}, {transform_indices = @transform_8, window_bounds = array<i64: 2, 1, 32>}, {transform_indices = @transform_9, window_bounds = array<i64: 2, 1, 8>}]} {
    %c0_i32 = arith.constant 0 : i32
    %0 = arith.cmpi eq, %arg1, %c0_i32 : i32
    %1 = arith.extui %0 : i1 to i32
    %c0_i32_0 = arith.constant 0 : i32
    %2 = arith.cmpi ne, %1, %c0_i32_0 : i32
    scf.if %2 {
      %cst_27 = arith.constant 0.000000e+00 : f32
      %35 = vector.broadcast %cst_27 : f32 to vector<2x32xf32>
      %c0_28 = arith.constant 0 : index
      %c0_29 = arith.constant 0 : index
      %36 = vector.load %arg12[%c0_28, %c0_29] : memref<2x32xf32, #tpu.memory_space<vmem>>, vector<2x32xf32>
      tpu.vector_store %arg12[%c0_28, %c0_29], %35 {strides = array<i32>} : memref<2x32xf32, #tpu.memory_space<vmem>>, vector<2x32xf32>,
    } else {
    }
    %c0 = arith.constant 0 : index
    %c0_1 = arith.constant 0 : index
    %3 = vector.load %arg3[%c0, %c0_1] : memref<32x4xf32, #tpu.memory_space<vmem>>, vector<32x4xf32>
    %c0_2 = arith.constant 0 : index
    %c0_3 = arith.constant 0 : index
    %4 = vector.load %arg4[%c0_2, %c0_3] : memref<32x1xf32, #tpu.memory_space<vmem>>, vector<32x1xf32>
    %cst = arith.constant 1.000000e+00 : f32
    %5 = vector.broadcast %cst : f32 to vector<1x256xf32>
    %cst_4 = arith.constant 0.000000e+00 : f32
    %6 = vector.broadcast %cst_4 : f32 to vector<1x32xf32>
    %c0_5 = arith.constant 0 : index
    %c0_6 = arith.constant 0 : index
    %c0_7 = arith.constant 0 : index
    %7 = vector.load %arg2[%c0_5, %c0_6, %c0_7] : memref<2x4x256xf32, #tpu.memory_space<vmem>>, vector<1x4x256xf32>
    %8 = vector.shape_cast %7 : vector<1x4x256xf32> to vector<4x256xf32>
    %cst_8 = arith.constant dense<0.000000e+00> : vector<32x256xf32>
    %9 = tpu.matmul %3, %8, %cst_8 {dimension_numbers = #tpu.dot_dimension_numbers<[1], [0], [0], [1], [0, 0, 1, 1], [], []>} : vector<32x4xf32>, vector<4x256xf32>, vector<32x256xf32> -> vector<32x256xf32>
    %10 = vector.broadcast %4 : vector<32x1xf32> to vector<32x256xf32>
    %11 = arith.addf %9, %10 : vector<32x256xf32>
    %cst_9 = arith.constant 0.000000e+00 : f32
    %12 = vector.broadcast %cst_9 : f32 to vector<32x256xf32>
    %13 = arith.maximumf %11, %12 : vector<32x256xf32>
    %cst_10 = arith.constant dense<0.000000e+00> : vector<1x32xf32>
    %14 = tpu.matmul %5, %13, %cst_10 {dimension_numbers = #tpu.dot_dimension_numbers<[1], [1], [0], [0], [0, 0, 1, 0], [], []>} : vector<1x256xf32>, vector<32x256xf32>, vector<1x32xf32> -> vector<1x32xf32>
    %15 = arith.addf %6, %14 : vector<1x32xf32>
    %c0_11 = arith.constant 0 : index
    %c0_12 = arith.constant 0 : index
    %16 = vector.load %arg12[%c0_11, %c0_12] : memref<2x32xf32, #tpu.memory_space<vmem>>, vector<1x32xf32>
    %17 = arith.addf %16, %15 : vector<1x32xf32>
    %c0_13 = arith.constant 0 : index
    %c0_14 = arith.constant 0 : index
    %18 = vector.load %arg12[%c0_13, %c0_14] : memref<2x32xf32, #tpu.memory_space<vmem>>, vector<1x32xf32>
    tpu.vector_store %arg12[%c0_13, %c0_14], %17 {strides = array<i32>} : memref<2x32xf32, #tpu.memory_space<vmem>>, vector<1x32xf32>,
    %cst_15 = arith.constant 0.000000e+00 : f32
    %19 = vector.broadcast %cst_15 : f32 to vector<1x32xf32>
    %c1 = arith.constant 1 : index
    %c0_16 = arith.constant 0 : index
    %c0_17 = arith.constant 0 : index
    %20 = vector.load %arg2[%c1, %c0_16, %c0_17] : memref<2x4x256xf32, #tpu.memory_space<vmem>>, vector<1x4x256xf32>
    %21 = vector.shape_cast %20 : vector<1x4x256xf32> to vector<4x256xf32>
    %cst_18 = arith.constant dense<0.000000e+00> : vector<32x256xf32>
    %22 = tpu.matmul %3, %21, %cst_18 {dimension_numbers = #tpu.dot_dimension_numbers<[1], [0], [0], [1], [0, 0, 1, 1], [], []>} : vector<32x4xf32>, vector<4x256xf32>, vector<32x256xf32> -> vector<32x256xf32>
    %23 = vector.broadcast %4 : vector<32x1xf32> to vector<32x256xf32>
    %24 = arith.addf %22, %23 : vector<32x256xf32>
    %cst_19 = arith.constant 0.000000e+00 : f32
    %25 = vector.broadcast %cst_19 : f32 to vector<32x256xf32>
    %26 = arith.maximumf %24, %25 : vector<32x256xf32>
    %cst_20 = arith.constant dense<0.000000e+00> : vector<1x32xf32>
    %27 = tpu.matmul %5, %26, %cst_20 {dimension_numbers = #tpu.dot_dimension_numbers<[1], [1], [0], [0], [0, 0, 1, 0], [], []>} : vector<1x256xf32>, vector<32x256xf32>, vector<1x32xf32> -> vector<1x32xf32>
    %28 = arith.addf %19, %27 : vector<1x32xf32>
    %c1_21 = arith.constant 1 : index
    %c0_22 = arith.constant 0 : index
    %29 = vector.load %arg12[%c1_21, %c0_22] : memref<2x32xf32, #tpu.memory_space<vmem>>, vector<1x32xf32>
    %30 = arith.addf %29, %28 : vector<1x32xf32>
    %c1_23 = arith.constant 1 : index
    %c0_24 = arith.constant 0 : index
    %31 = vector.load %arg12[%c1_23, %c0_24] : memref<2x32xf32, #tpu.memory_space<vmem>>, vector<1x32xf32>
    tpu.vector_store %arg12[%c1_23, %c0_24], %30 {strides = array<i32>} : memref<2x32xf32, #tpu.memory_space<vmem>>, vector<1x32xf32>,
    %c0_i32_25 = arith.constant 0 : i32
    %32 = arith.cmpi eq, %arg1, %c0_i32_25 : i32
    %33 = arith.extui %32 : i1 to i32
    %c0_i32_26 = arith.constant 0 : i32
    %34 = arith.cmpi ne, %33, %c0_i32_26 : i32
    scf.if %34 {
      %c0_27 = arith.constant 0 : index
      %c0_28 = arith.constant 0 : index
      %35 = vector.load %arg12[%c0_27, %c0_28] : memref<2x32xf32, #tpu.memory_space<vmem>>, vector<2x32xf32>
      %cst_29 = arith.constant 3.906250e-03 : f32
      %36 = vector.broadcast %cst_29 : f32 to vector<2x32xf32>
      %37 = arith.mulf %35, %36 : vector<2x32xf32>
      %38 = arith.mulf %37, %37 : vector<2x32xf32>
      %cst_30 = arith.constant dense<0.000000e+00> : vector<2xf32>
      %39 = vector.multi_reduction <add>, %38, %cst_30 [1] : vector<2x32xf32> to vector<2xf32>
      %40 = vector.shape_cast %39 : vector<2xf32> to vector<2x1xf32>
      %cst_31 = arith.constant 9.99999996E-13 : f32
      %41 = vector.broadcast %cst_31 : f32 to vector<2x1xf32>
      %42 = arith.addf %40, %41 : vector<2x1xf32>
      %43 = math.rsqrt %42 : vector<2x1xf32>
      %44 = vector.broadcast %43 : vector<2x1xf32> to vector<2x32xf32>
      %45 = arith.mulf %37, %44 : vector<2x32xf32>
      %c0_32 = arith.constant 0 : index
      %c0_33 = arith.constant 0 : index
      %c0_34 = arith.constant 0 : index
      %46 = vector.load %arg10[%c0_32, %c0_33, %c0_34] : memref<2x1x32xf32, #tpu.memory_space<vmem>>, vector<2x1x32xf32>
      %47 = vector.shape_cast %46 : vector<2x1x32xf32> to vector<2x32xf32>
      %48 = vector.shape_cast %45 : vector<2x32xf32> to vector<2x1x32xf32>
      tpu.vector_store %arg10[%c0_32, %c0_33, %c0_34], %48 {strides = array<i32>} : memref<2x1x32xf32, #tpu.memory_space<vmem>>, vector<2x1x32xf32>,
      %c0_35 = arith.constant 0 : index
      %c0_36 = arith.constant 0 : index
      %49 = vector.load %arg5[%c0_35, %c0_36] : memref<32x16xf32, #tpu.memory_space<vmem>>, vector<32x16xf32>
      %cst_37 = arith.constant dense<0.000000e+00> : vector<2x16xf32>
      %50 = tpu.matmul %45, %49, %cst_37 {dimension_numbers = #tpu.dot_dimension_numbers<[1], [0], [0], [1], [0, 0, 1, 1], [], []>} : vector<2x32xf32>, vector<32x16xf32>, vector<2x16xf32> -> vector<2x16xf32>
      %c0_38 = arith.constant 0 : index
      %c0_39 = arith.constant 0 : index
      %51 = vector.load %arg6[%c0_38, %c0_39] : memref<1x16xf32, #tpu.memory_space<vmem>>, vector<1x16xf32>
      %52 = vector.broadcast %51 : vector<1x16xf32> to vector<2x16xf32>
      %53 = arith.addf %50, %52 : vector<2x16xf32>
      %c0_40 = arith.constant 0 : index
      %c0_41 = arith.constant 0 : index
      %c0_42 = arith.constant 0 : index
      %54 = vector.load %arg9[%c0_40, %c0_41, %c0_42] : memref<2x1x16xf32, #tpu.memory_space<vmem>>, vector<2x1x16xf32>
      %55 = vector.shape_cast %54 : vector<2x1x16xf32> to vector<2x16xf32>
      %56 = vector.shape_cast %53 : vector<2x16xf32> to vector<2x1x16xf32>
      tpu.vector_store %arg9[%c0_40, %c0_41, %c0_42], %56 {strides = array<i32>} : memref<2x1x16xf32, #tpu.memory_space<vmem>>, vector<2x1x16xf32>,
      %c0_43 = arith.constant 0 : index
      %c0_44 = arith.constant 0 : index
      %57 = vector.load %arg7[%c0_43, %c0_44] : memref<16x8xf32, #tpu.memory_space<vmem>>, vector<16x8xf32>
      %cst_45 = arith.constant dense<0.000000e+00> : vector<2x8xf32>
      %58 = tpu.matmul %53, %57, %cst_45 {dimension_numbers = #tpu.dot_dimension_numbers<[1], [0], [0], [1], [0, 0, 1, 1], [], []>} : vector<2x16xf32>, vector<16x8xf32>, vector<2x8xf32> -> vector<2x8xf32>
      %c0_46 = arith.constant 0 : index
      %c0_47 = arith.constant 0 : index
      %59 = vector.load %arg8[%c0_46, %c0_47] : memref<1x8xf32, #tpu.memory_space<vmem>>, vector<1x8xf32>
      %60 = vector.broadcast %59 : vector<1x8xf32> to vector<2x8xf32>
      %61 = arith.addf %58, %60 : vector<2x8xf32>
      %c0_48 = arith.constant 0 : index
      %c0_49 = arith.constant 0 : index
      %c0_50 = arith.constant 0 : index
      %62 = vector.load %arg11[%c0_48, %c0_49, %c0_50] : memref<2x1x8xf32, #tpu.memory_space<vmem>>, vector<2x1x8xf32>
      %63 = vector.shape_cast %62 : vector<2x1x8xf32> to vector<2x8xf32>
      %64 = vector.shape_cast %61 : vector<2x8xf32> to vector<2x1x8xf32>
      tpu.vector_store %arg11[%c0_48, %c0_49, %c0_50], %64 {strides = array<i32>} : memref<2x1x8xf32, #tpu.memory_space<vmem>>, vector<2x1x8xf32>,
    } else {
    }
    return
  }
  func.func @transform_0(%arg0: i32, %arg1: i32) -> (i32, i32, i32) {
    %c0_i32 = arith.constant 0 : i32
    %c0_i32_0 = arith.constant 0 : i32
    return %arg0, %c0_i32, %arg1 : i32, i32, i32
  }
  func.func @transform_1(%arg0: i32, %arg1: i32) -> (i32, i32) {
    %c0_i32 = arith.constant 0 : i32
    %c0_i32_0 = arith.constant 0 : i32
    %c0_i32_1 = arith.constant 0 : i32
    return %c0_i32, %c0_i32_0 : i32, i32
  }
  func.func @transform_2(%arg0: i32, %arg1: i32) -> (i32, i32) {
    %c0_i32 = arith.constant 0 : i32
    %c0_i32_0 = arith.constant 0 : i32
    %c0_i32_1 = arith.constant 0 : i32
    return %c0_i32, %c0_i32_0 : i32, i32
  }
  func.func @transform_3(%arg0: i32, %arg1: i32) -> (i32, i32) {
    %c0_i32 = arith.constant 0 : i32
    %c0_i32_0 = arith.constant 0 : i32
    %c0_i32_1 = arith.constant 0 : i32
    return %c0_i32, %c0_i32_0 : i32, i32
  }
  func.func @transform_4(%arg0: i32, %arg1: i32) -> (i32, i32) {
    %c0_i32 = arith.constant 0 : i32
    %c0_i32_0 = arith.constant 0 : i32
    %c0_i32_1 = arith.constant 0 : i32
    return %c0_i32, %c0_i32_0 : i32, i32
  }
  func.func @transform_5(%arg0: i32, %arg1: i32) -> (i32, i32) {
    %c0_i32 = arith.constant 0 : i32
    %c0_i32_0 = arith.constant 0 : i32
    %c0_i32_1 = arith.constant 0 : i32
    return %c0_i32, %c0_i32_0 : i32, i32
  }
  func.func @transform_6(%arg0: i32, %arg1: i32) -> (i32, i32) {
    %c0_i32 = arith.constant 0 : i32
    %c0_i32_0 = arith.constant 0 : i32
    %c0_i32_1 = arith.constant 0 : i32
    return %c0_i32, %c0_i32_0 : i32, i32
  }
  func.func @transform_7(%arg0: i32, %arg1: i32) -> (i32, i32, i32) {
    %c0_i32 = arith.constant 0 : i32
    %c0_i32_0 = arith.constant 0 : i32
    %c0_i32_1 = arith.constant 0 : i32
    return %arg0, %c0_i32, %c0_i32_0 : i32, i32, i32
  }
  func.func @transform_8(%arg0: i32, %arg1: i32) -> (i32, i32, i32) {
    %c0_i32 = arith.constant 0 : i32
    %c0_i32_0 = arith.constant 0 : i32
    %c0_i32_1 = arith.constant 0 : i32
    return %arg0, %c0_i32, %c0_i32_0 : i32, i32, i32
  }
  func.func @transform_9(%arg0: i32, %arg1: i32) -> (i32, i32, i32) {
    %c0_i32 = arith.constant 0 : i32
    %c0_i32_0 = arith.constant 0 : i32
    %c0_i32_1 = arith.constant 0 : i32
    return %arg0, %c0_i32, %c0_i32_0 : i32, i32, i32
  }
}

</mosaic_0001>

<bundles_post_ra>
// kernel: tpu_custom_call.1
= control target key start
LH: loop header
LB: loop body
LE: loop exit
PB: predicated region body
PF: predicated region fallthrough
CT: control target
= control target key end

     0   :  { %15 = vsyncpa [#allocation4], 0  ;;  %vm81_vm0 = vcmask 1043456   ;;  %v867_v3 = vmov 0.0   ;;  %vm68_vm1 = vcmask 31744   ;;  %v868_v6 = vmov 0   ;;  %s1049_s0 = inlined_call_operand.vmem [shape: f32[2,4,256], index: 0, kind: input, shape index: {}]   ;;  %s1050_s1 = inlined_call_operand.vmem [shape: f32[32,4], index: 1, kind: input, shape index: {}]   ;;  %s1051_s2 = inlined_call_operand.vmem [shape: f32[32,1], index: 2, kind: input, shape index: {}]   ;;  %s1052_s3 = inlined_call_operand.vmem [shape: f32[32,16], index: 3, kind: input, shape index: {}]   ;;  %s1053_s4 = inlined_call_operand.vmem [shape: f32[1,16], index: 4, kind: input, shape index: {}]   ;;  %s1054_s5 = inlined_call_operand.vmem [shape: f32[16,8], index: 5, kind: input, shape index: {}]   ;;  %s1055_s6 = inlined_call_operand.vmem [shape: f32[1,8], index: 6, kind: input, shape index: {}]   ;;  %s1056_s7 = inlined_call_operand.hbm [shape: f32[2,1,16], index: 7, kind: output, shape index: {0}]   ;;  %s1057_s8 = inlined_call_operand.hbm [shape: f32[2,1,32], index: 8, kind: output, shape index: {1}]   ;;  %s1058_s9 = inlined_call_operand.hbm [shape: f32[2,1,8], index: 9, kind: output, shape index: {2}]  }
   0x1   :  { %v45_v0 = vld [vmem:[%s1049_s0] sm:$0xff]  ;;  %v750_v1 = vld [vmem:[%s1049_s0 + $0x8] sm:$0xff]  ;;  %150 = vmatprep.mubr.f32.mxu0 %v867_v3  ;;  %798 = vset.pattern.permute.xlu1 %v868_v6  ;;  %v44_v8 = vld [vmem:[%s1051_s2 + $0x18] sm:$0xff] }
   0x2   :  { %v67_v2 = vcombine.high %v45_v0, %v45_v0  ;;  %v260_v4 = vcombine.high %v750_v1, %v750_v1  ;;  %v37_v5 = vld [vmem:[%s1050_s1] sm:$0xff]  ;;  %v42_v7 = vld [vmem:[%s1051_s2 + $0x8] sm:$0xff]  ;;  %797 = vset.pattern.permute.xlu0 %v868_v6 }
   0x3   :  { %53 = vperm.xlu1 %798, %v42_v7  }
   0x4   :  { %744 = vmatprep.subr.msk.mxu0 %vm81_vm0, %v67_v2 }
   0x5   :  { %16 = vsyncpa [#allocation6], 0  ;;  %745 = vmatpush1.msk.msra.mxu0 %vm81_vm0, %v45_v0  ;;  %v41_v9 = vld [vmem:[%s1051_s2] sm:$0xff]  ;;  %63 = vperm.xlu0 %797, %v44_v8   ;;  %v43_v10 = vld [vmem:[%s1051_s2 + $0x10] sm:$0xff]  ;;  %v869_v14 = vmov 1.0   ;;  %vm35_vm2 = vcmask 254976  }
   0x6   :  { %746 = vmatmul.mubr.msk.f32.vlgmr.msra.gmra.mxu0 %vm68_vm1, %v37_v5  ;;  %751 = vmatprep.subr.msk.mxu0 %vm81_vm0, %v260_v4  ;;  %v38_v11 = vld [vmem:[%s1050_s1 + $0x8] sm:$0xff]  ;;  %v39_v12 = vld [vmem:[%s1050_s1 + $0x10] sm:$0xff]  ;;  %v40_v13 = vld [vmem:[%s1050_s1 + $0x18] sm:$0xff]  ;;  %36 = vst.msk [vmem:[#allocation2] sm:$0x3] %vm35_vm2, %v867_v3  ;;  %vm255_vm3 = vcmask 253952  }
   0x7   :  { %752 = vmatpush1.msk.msra.mxu0 %vm81_vm0, %v750_v1  ;;  %156 = vmatprep.mubr.f32.mxu0 %v867_v3  ;;  %vm870_vm4 = vmmov 0   ;;  %vm486_vm5 = vcmask 261120   ;;  %vm596_vm6 = vcmask 130048   ;;  %vm584_vm7 = vcmask 122880   ;;  %s873_s0 = smov [#allocation3]  }
   0x8   :  { %48 = vperm.xlu1 %798, %v41_v9   ;;  %769 = vmatprep.subr.mxu0 %v867_v3 }
   0x9   :  { %58 = vperm.xlu0 %797, %v43_v10   ;;  %247 = vmatprep.mubr.f32.mxu1 %v869_v14 }
   0xa   :  { %747 = vmatmul.mubr.msk.f32.gmra.mxu0 %vm68_vm1, %v38_v11 }
   0xb   :  { %162 = vmatprep.mubr.f32.mxu0 %v867_v3 }
   0xd   :  { %v253_v4 = vld [vmem:[#allocation2] sm:$0x1]  ;;  %v432_v8 = vld [vmem:[#allocation2 + $0x1] sm:$0x1] }
   0xe   :  { %748 = vmatmul.mubr.msk.f32.gmra.mxu0 %vm68_vm1, %v39_v12 }
   0xf   :  { %168 = vmatprep.mubr.f32.mxu0 %v867_v3 }
  0x12   :  { %749 = vmatmul.mubr.msk.f32.gmra.mxu0 %vm68_vm1, %v40_v13 }
  0x13   :  { %329 = vmatprep.mubr.f32.mxu0 %v867_v3 }
  0x16   :  { %753 = vmatmul.mubr.msk.f32.vlgmr.msra.gmra.mxu0 %vm68_vm1, %v37_v5 }
  0x17   :  { %335 = vmatprep.mubr.f32.mxu0 %v867_v3 }
  0x1a   :  { %754 = vmatmul.mubr.msk.f32.gmra.mxu0 %vm68_vm1, %v38_v11 }
  0x1b   :  { %341 = vmatprep.mubr.f32.mxu0 %v867_v3 }
  0x1e   :  { %755 = vmatmul.mubr.msk.f32.gmra.mxu0 %vm68_vm1, %v39_v12 }
  0x1f   :  { %347 = vmatprep.mubr.f32.mxu0 %v867_v3 }
  0x22   :  { %756 = vmatmul.mubr.msk.f32.gmra.mxu0 %vm68_vm1, %v40_v13 }
  0x23   :  { %777 = vmatprep.mubr.msk.f32.mxu0 %vm870_vm4, %v867_v3 }
  0x7e   :  { %v54_v28 = vpop.permute.xlu1 %53 }
  0x80   :  { %v64_v19 = vpop.permute.xlu0 %63 }
  0x83   :  { %v49_v37 = vpop.permute.xlu1 %48 }
  0x84   :  { %v59_v23 = vpop.permute.xlu0 %58 }
  0xc6   :  { %v152_v15 = vpop.f32.mrf.mxu0 }
  0xc7   :  { %v153_v44 = vadd.f32 %v152_v15, %v49_v37 }
  0xc8   :  { %v154_v16 = vpop.f32.mrf.mxu0 }
  0xc9   :  { %v155_v41 = vadd.f32 %v154_v16, %v49_v37  ;;  %v175_v51 = vmax.f32 %v153_v44, 0.0 }
  0xca   :  { %v158_v17 = vpop.f32.mrf.mxu0 }
  0xcb   :  { %v159_v38 = vadd.f32 %v158_v17, %v54_v28  ;;  %v176_v47 = vmax.f32 %v155_v41, 0.0  ;;  %v477_v17 = vld [vmem:[%s1052_s3 + $0x10] sm:$0xff] }
  0xcc   :  { %v160_v18 = vpop.f32.mrf.mxu0 }
  0xcd   :  { %v161_v34 = vadd.f32 %v160_v18, %v54_v28  ;;  %v177_v45 = vmax.f32 %v159_v38, 0.0  ;;  %v476_v18 = vld [vmem:[%s1052_s3 + $0x8] sm:$0xff] }
  0xce   :  { %v164_v20 = vpop.f32.mrf.mxu0 }
  0xcf   :  { %v165_v33 = vadd.f32 %v164_v20, %v59_v23  ;;  %v178_v42 = vmax.f32 %v161_v34, 0.0  ;;  %v588_v34 = vld [vmem:[%s1054_s5 + $0x8] sm:$0xff] }
  0xd0   :  { %v166_v21 = vpop.f32.mrf.mxu0 }
  0xd1   :  { %v167_v26 = vadd.f32 %v166_v21, %v59_v23  ;;  %v179_v40 = vmax.f32 %v165_v33, 0.0 }
  0xd2   :  { %v170_v22 = vpop.f32.mrf.mxu0 }
  0xd3   :  { %v171_v24 = vadd.f32 %v170_v22, %v64_v19  ;;  %v180_v35 = vmax.f32 %v167_v26, 0.0  ;;  %v871_v22 = vmov 1966171168  }
  0xd4   :  { %v172_v25 = vpop.f32.mrf.mxu0 }
  0xd5   :  { %v173_v27 = vadd.f32 %v172_v25, %v64_v19  ;;  %v181_v31 = vmax.f32 %v171_v24, 0.0  ;;  %v452_v24 = vlaneseq }
  0xd6   :  { %v331_v29 = vpop.f32.mrf.mxu0 }
  0xd7   :  { %v182_v30 = vmax.f32 %v173_v27, 0.0  ;;  %v332_v63 = vadd.f32 %v331_v29, %v49_v37  ;;  %v453_v26 = vshrl.u32 %v452_v24, 7 }
  0xd8   :  { %v333_v32 = vpop.f32.mrf.mxu0 }
  0xd9   :  { %207 = vmatprep.subr.mxu1 %v182_v30  ;;  %v334_v61 = vadd.f32 %v333_v32, %v49_v37  ;;  %v354_v2 = vmax.f32 %v332_v63, 0.0 }
  0xda   :  { %208 = vmatpush1.xpose.msra.mxu1 %v181_v31  ;;  %v337_v36 = vpop.f32.mrf.mxu0 }
  0xdb   :  { %209 = vmatprep.subr.mxu1 %v180_v35  ;;  %v338_v59 = vadd.f32 %v337_v36, %v54_v28  ;;  %v355_v1 = vmax.f32 %v334_v61, 0.0  ;;  %v587_v35 = vld [vmem:[%s1054_s5] sm:$0xff]  ;;  %s872_s5 = smov [#allocation5]  }
  0xdc   :  { %v339_v39 = vpop.f32.mrf.mxu0  ;;  %v757_v36 = vld [vmem:[%s1053_s4] ss:$0 sm:$0xff]  ;;  %s714_s18 = sshll.u32 %s872_s5, 4  ;;  %s702_s4 = sshll.u32 %s873_s0, 4  ;;  %s715_s18 = int_to_ptr.vmem [resolvable:$true] %s714_s18  ;;  %s703_s4 = int_to_ptr.vmem [resolvable:$true] %s702_s4 }
  0xdd   :  { %v340_v57 = vadd.f32 %v339_v39, %v54_v28  ;;  %v356_v0 = vmax.f32 %v338_v59, 0.0  ;;  %s803_s19 = scalar_lea.vmem %s715_s18, 32  ;;  %p808_p1 = scmp.lt.s32.totalorder %s715_s18, %s715_s18 }
  0xde   :  { %210 = vmatpush1.xpose.msra.mxu1 %v179_v40  ;;  %v343_v43 = vpop.f32.mrf.mxu0  ;;  %p804_p0 = scmp.ne.s32.totalorder %s715_s18, %s803_s19  ;;  %p809_p2 = scmp.lt.s32.totalorder %s803_s19, %s803_s19 }
  0xdf   :  { %211 = vmatprep.subr.mxu1 %v178_v42  ;;  %v344_v55 = vadd.f32 %v343_v43, %v59_v23  ;;  %v357_v62 = vmax.f32 %v340_v57, 0.0 }
  0xe0   :  { %v345_v46 = vpop.f32.mrf.mxu0  ;;  %p810_p3 = por %p809_p2, %p808_p1 }
  0xe1   :  { %v346_v52 = vadd.f32 %v345_v46, %v59_v23  ;;  %v358_v60 = vmax.f32 %v344_v55, 0.0  ;;  %v450_v23 = vunpack.c.l.s4 %v871_v22 }
  0xe2   :  { %212 = vmatpush1.xpose.msra.mxu1 %v177_v45  ;;  %v349_v48 = vpop.f32.mrf.mxu0  ;;  %p811_p4 = pnand %p810_p3, %p804_p0 }
  0xe3   :  { %213 = vmatprep.subr.mxu1 %v176_v47  ;;  %v350_v49 = vadd.f32 %v349_v48, %v64_v19  ;;  %v359_v58 = vmax.f32 %v346_v52, 0.0  ;;  %v451_v25 = vunpack.c.0.s8 %v450_v23 }
  0xe4   :  { %v351_v50 = vpop.f32.mrf.mxu0 }
  0xe5   :  { %v352_v53 = vadd.f32 %v351_v50, %v64_v19  ;;  %v360_v56 = vmax.f32 %v350_v49, 0.0  ;;  %v475_v19 = vld [vmem:[%s1052_s3] sm:$0xff]  ;;  %v1005_v27 = vsub.s32 %v451_v25, %v453_v26 }
  0xe6   :  { %214 = vmatpush1.xpose.msra.mxu1 %v175_v51 }
  0xe7   :  { %v361_v54 = vmax.f32 %v352_v53, 0.0 }
  0xe9   :  { %248 = vmatmul.mubr.f32.vlgmr.msra.gmra.mxu1 %v869_v14  ;;  %386 = vmatprep.subr.mxu1 %v361_v54 }
  0xea   :  { %387 = vmatpush1.xpose.msra.mxu1 %v360_v56  ;;  %426 = vmatprep.mubr.f32.mxu1 %v869_v14 }
  0xeb   :  { %388 = vmatprep.subr.mxu1 %v359_v58 }
  0xee   :  { %389 = vmatpush1.xpose.msra.mxu1 %v358_v60 }
  0xef   :  { %390 = vmatprep.subr.mxu1 %v357_v62 }
  0xf2   :  { %391 = vmatpush1.xpose.msra.mxu1 %v356_v0 }
  0xf3   :  { %392 = vmatprep.subr.mxu1 %v355_v1 }
  0xf6   :  { %393 = vmatpush1.xpose.msra.mxu1 %v354_v2 }
  0xf7   :  { %780 = vmatprep.subr.mxu1 %v867_v3 }
  0xf9   :  { %427 = vmatmul.mubr.f32.vlgmr.msra.gmra.mxu1 %v869_v14  ;;  %v478_v14 = vld [vmem:[%s1052_s3 + $0x18] sm:$0xff] }
  0xfa   :  { %770 = vmatpush3.msra.mxu0 %v478_v14  ;;  %784 = vmatprep.mubr.msk.f32.mxu1 %vm870_vm4, %v867_v3 }
  0xfb   :  { %771 = vmatprep.subr.mxu0 %v867_v3  ;;  %781 = vmatpush3.msra.mxu1 %v588_v34 }
  0xfc   :  { %772 = vmatpush3.msra.mxu0 %v477_v17  ;;  %782 = vmatprep.subr.mxu1 %v867_v3 }
  0xfd   :  { %773 = vmatprep.subr.mxu0 %v867_v3  ;;  %783 = vmatpush3.msra.mxu1 %v587_v35 }
  0xfe   :  { %774 = vmatpush3.msra.mxu0 %v476_v18 }
  0xff   :  { %775 = vmatprep.subr.mxu0 %v867_v3 }
 0x100   :  { %776 = vmatpush3.msra.mxu0 %v475_v19 }
 0x1a9   :  { %v249_v5 = vpop.f32.mrf.mxu1 }
 0x1aa   :  { %v254_v6 = vadd.f32 %v253_v4, %v249_v5 }
 0x1ab   :  { %v251_v7 = vpop.f32.mrf.mxu1 }
 0x1ac   :  { %256 = vst.msk [vmem:[#allocation2] sm:$0x1] %vm255_vm3, %v254_v6 }
 0x1b9   :  { %v428_v9 = vpop.f32.mrf.mxu1 }
 0x1ba   :  { %v433_v10 = vadd.f32 %v432_v8, %v428_v9 }
 0x1bb   :  { %v430_v11 = vpop.f32.mrf.mxu1 }
 0x1bc   :  { %434 = vst.msk [vmem:[#allocation2 + $0x1] sm:$0x1] %vm255_vm3, %v433_v10 }
 0x1c3   :  { %v438_v12 = vld [vmem:[#allocation2] sm:$0x3] }
 0x1c4   :  { %v439_v13 = vmul.f32 0.00390625, %v438_v12 }
 0x1c6   :  { %v440_v15 = vmul.f32 %v439_v13, %v439_v13 }
 0x1c8   :  { %v442_v16 = vsel %vm35_vm2, %v440_v15, 0.0 }
 0x1c9   :  { %443 = vadd.xlane.f32.xlu0 %v442_v16 }
 0x252   :  { %v444_v20 = vpop.xlane.xlu0 %443 }
 0x253   :  { %v445_v21 = vadd.f32 1e-12, %v444_v20 }
 0x255   :  { %801 = vrsqrt.f32 %v445_v21 }
 0x262   :  { %v802_v28 = vpop.eup %801 }
 0x263   :  { %v447_v29 = vmul.f32 %v802_v28, %v439_v13 }
 0x265   :  { %778 = vmatmul.mubr.msk.f32.vlgmr.msra.gmra.mxu0 %vm486_vm5, %v447_v29  ;;  %v455_v30 = vrot.slane %v447_v29, %v1005_v27 }
 0x267   :  { %v456_v31 = vcombine.high %v455_v30, %v455_v30  ;;  %v463_v32 = vrot.slane %v455_v30, %v1005_v27 }
 0x269   :  { %v470_v33 = vrot.slane %v456_v31, %v1005_v27  ;;  %473 = vst.msk [vmem:[#allocation5] sm:$0x1] %vm255_vm3, %v463_v32 }
 0x26b   :  { %474 = vst.msk [vmem:[#allocation5 + $0x1] sm:$0x1] %vm255_vm3, %v470_v33 }
 0x325   :  { %v555_v37 = vpop.f32.mrf.mxu0 }
 0x326   :  { %v556_v38 = vadd.f32 %v757_v36, %v555_v37 }
 0x327   :  { %v779_v39 = vpop.f32.mrf.mxu0 }
 0x328   :  { %v566_v40 = vrot.slane %v556_v38, %v1005_v27  ;;  %785 = vmatmul.mubr.msk.f32.vlgmr.msra.gmra.mxu1 %vm596_vm6, %v556_v38 }
 0x32a   :  { %v567_v41 = vcombine.high %v566_v40, %v566_v40  ;;  %v574_v3 = vrot.slane %v566_v40, %v1005_v27 }
 0x32c   :  { %v581_v42 = vrot.slane %v567_v41, %v1005_v27  ;;  %585 = vst.msk [vmem:[#allocation3] sm:$0x1] %vm584_vm7, %v574_v3 }
 0x32e   :  { %586 = vst.msk [vmem:[#allocation3 + $0x1] sm:$0x1] %vm584_vm7, %v581_v42 }
 0x32f   :  { %814 = shalt.err (!%p811_p4)
}
 0x330   :  { %s874_s20 = smov 16   ;;  %s875_s21 = smov 1  }
 0x331   :  { %720 = dma.vmem_to_hbm [thread:$0]  %s715_s18, 32, %s1057_s8, [#allocation6], %s874_s20, %s874_s20, %s875_s21  }
 0x332   :  { %s823_s24 = scalar_lea.vmem %s703_s4, 32  ;;  %p828_p6 = scmp.lt.s32.totalorder %s703_s4, %s703_s4 }
 0x333   :  { %p824_p5 = scmp.ne.s32.totalorder %s703_s4, %s823_s24  ;;  %p829_p7 = scmp.lt.s32.totalorder %s823_s24, %s823_s24 }
 0x335   :  { %p830_p8 = por %p829_p7, %p828_p6 }
 0x337   :  { %p831_p9 = pnand %p830_p8, %p824_p5 }
 0x339   :  { %834 = shalt.err (!%p831_p9)
}
 0x33a   :  { %708 = dma.vmem_to_hbm [thread:$0]  %s703_s4, 32, %s1056_s7, [#allocation4], %s874_s20, %s874_s20, %s875_s21   ;;  %vm694_vm8 = vcmask 57344  }
 0x33b   :  { %v759_v43 = vld [vmem:[%s1055_s6] ss:$0 sm:$0xff]  ;;  %s876_s8 = smov [#allocation7]  }
 0x33c   :  { %s726_s27 = sshll.u32 %s876_s8, 4  ;;  %s727_s27 = int_to_ptr.vmem [resolvable:$true] %s726_s27 }
 0x33d   :  { %s843_s7 = scalar_lea.vmem %s727_s27, 32  ;;  %p848_p11 = scmp.lt.s32.totalorder %s727_s27, %s727_s27 }
 0x33e   :  { %p844_p10 = scmp.ne.s32.totalorder %s727_s27, %s843_s7  ;;  %p849_p12 = scmp.lt.s32.totalorder %s843_s7, %s843_s7 }
 0x340   :  { %p850_p13 = por %p849_p12, %p848_p11 }
 0x342   :  { %p851_p0 = pnand %p850_p13, %p844_p10 }
 0x3e8   :  { %v665_v44 = vpop.f32.mrf.mxu1 }
 0x3e9   :  { %v666_v45 = vadd.f32 %v759_v43, %v665_v44 }
 0x3ea   :  { %v786_v46 = vpop.f32.mrf.mxu1 }
 0x3eb   :  { %v676_v47 = vrot.slane %v666_v45, %v1005_v27 }
 0x3ed   :  { %v677_v48 = vcombine.high %v676_v47, %v676_v47  ;;  %v684_v49 = vrot.slane %v676_v47, %v1005_v27 }
 0x3ef   :  { %v691_v50 = vrot.slane %v677_v48, %v1005_v27  ;;  %695 = vst.msk [vmem:[#allocation7] sm:$0x1] %vm694_vm8, %v684_v49 }
 0x3f1   :  { %696 = vst.msk [vmem:[#allocation7 + $0x1] sm:$0x1] %vm694_vm8, %v691_v50 }
 0x3f2   :  { %854 = shalt.err (!%p851_p0)
}
 0x3f3   :  { %732 = dma.vmem_to_hbm [thread:$0]  %s727_s27, 32, %s1058_s9, [#allocation6], %s874_s20, %s874_s20, %s875_s21  }
 0x3f4   :  { %863 = dma.done.wait [#allocation4], 32  }
 0x3f5   :  { %864 = vsyncadd [#allocation4], 4294967264 }
 0x3f6   :  { %865 = dma.done.wait [#allocation6], 64  }
 0x3f7   :  { %866 = vsyncadd [#allocation6], 4294967232 }
 0x3f8   :  { %742 = vsyncpa [#allocation4], 1 }
 0x3f9   :  { %743 = vsyncpa [#allocation6], 1 }

</bundles_post_ra>
